<compile_context>
chip_gen: v7x
topology: tpu7x:2x2x1
jax: 0.10.0
libtpu: 0.0.40
codegen_flags: <defaults>
</compile_context>

<pallas_src>
import math

import jax
import jax.numpy as jnp
from jax import lax
from jax.experimental import pallas as pl
from jax.experimental.pallas import tpu as pltpu


def _round_up(x, m):
    return ((x + m - 1) // m) * m


def _tpu_generation():
    """Best-effort TPU generation from device_kind; None if unknown."""
    try:
        kind = jax.devices()[0].device_kind.lower()
    except Exception:
        return None
    for tag, gen in (("v7", 7), ("v6", 6), ("v5", 5), ("v4", 4), ("v3", 3)):
        if tag in kind:
            return gen
    return None


def _gelu(h, approximate):
    if approximate:
        # tanh GELU runs on the EUP slot and co-issues with MXU pushes.
        return jax.nn.gelu(h, approximate=True)
    # Exact erf GELU (torch.nn.GELU() default).
    return 0.5 * h * (1.0 + lax.erf(h * (1.0 / math.sqrt(2.0))))


# --------------------------------------------------------------------------
# Kernels
# --------------------------------------------------------------------------
def _make_resident_kernel(approximate):
    """Weights fully resident in VMEM: single pass, no accumulator scratch."""

    def kernel(x_ref, w1_ref, b1_ref, w2_ref, b2_ref, o_ref):
        h = jnp.dot(x_ref[...], w1_ref[...], preferred_element_type=jnp.float32)
        h = h + b1_ref[...].astype(jnp.float32)
        h = _gelu(h, approximate)
        # Dropout(p=0.0) / eval mode is the identity.
        o_ref[...] = (jnp.dot(h.astype(w2_ref.dtype), w2_ref[...],
                              preferred_element_type=jnp.float32)
                      + b2_ref[...].astype(jnp.float32)).astype(o_ref.dtype)

    return kernel


def _make_streaming_kernel(tk_h, approximate):
    """Hidden dim streamed in chunks; resident (tm, D) f32 accumulator."""

    def kernel(x_ref, w1_ref, b1_ref, w2_ref, b2_ref, o_ref, acc_ref):
        hk = pl.program_id(1)

        @pl.when(hk == 0)
        def _init():
            acc_ref[...] = jnp.zeros_like(acc_ref)

        # First matmul chunk on the MXU (bf16 inputs, f32 accumulation).
        h = jnp.dot(x_ref[...], w1_ref[...], preferred_element_type=jnp.float32)
        # b1 is resident; slice the current hidden chunk (lane-aligned start).
        start = pl.multiple_of(hk * tk_h, tk_h)
        h = h + b1_ref[:, pl.ds(start, tk_h)].astype(jnp.float32)
        h = _gelu(h, approximate)
        # Dropout(p=0.0) / eval mode is the identity.
        # TODO(synk): training-mode dropout would need pltpu.prng_seed + prng_random_bits.

        acc_ref[...] += jnp.dot(h.astype(w2_ref.dtype), w2_ref[...],
                                preferred_element_type=jnp.float32)

        @pl.when(hk == pl.num_programs(1) - 1)
        def _finalize():
            o_ref[...] = (acc_ref[...]
                          + b2_ref[...].astype(jnp.float32)).astype(o_ref.dtype)

    return kernel


# --------------------------------------------------------------------------
# Wrapper
# --------------------------------------------------------------------------
def prepare_params(w1, b1, w2, b2, *, compute_dtype=jnp.bfloat16):
    """Cast weights to the compute dtype ONCE (amortize across calls).

    Passing the result to feed_forward() avoids re-reading f32 weights and
    writing bf16 copies to HBM on every invocation.
    """
    w1c = w1 if w1.dtype == compute_dtype else w1.astype(compute_dtype)
    w2c = w2 if w2.dtype == compute_dtype else w2.astype(compute_dtype)
    return w1c, b1.reshape(1, -1), w2c, b2.reshape(1, -1)


def feed_forward(x, w1, b1, w2, b2, *, tm=None, tk_h=None,
                 compute_dtype=jnp.bfloat16, approximate_gelu=False,
                 vmem_limit_bytes=None):
    """Eval-mode FeedForward: x (B, S, D) -> (B, S, D).

    Weights follow y = x @ W + b layout: w1 (D, H), w2 (H, D).
    Matmuls run in `compute_dtype` (bf16 default; pass None to keep the input
    dtype) with f32 accumulation.
    """
    B, S, D = x.shape
    H = w1.shape[1]
    out_dtype = x.dtype
    M = B * S

    if compute_dtype is None:
        compute_dtype = x.dtype
    cbytes = jnp.dtype(compute_dtype).itemsize
    obytes = jnp.dtype(out_dtype).itemsize
    bbytes = jnp.dtype(b1.dtype).itemsize

    gen = _tpu_generation()
    is_v7 = gen is not None and gen >= 7

    # --- per-generation defaults -------------------------------------------
    if vmem_limit_bytes is None:
        if is_v7:
            vmem_limit_bytes = 48 * 1024 * 1024    # 64 MiB physical; leave headroom
        elif gen in (5, 6):
            vmem_limit_bytes = 100 * 1024 * 1024   # 128 MiB physical
        else:
            vmem_limit_bytes = 64 * 1024 * 1024
    vmem_budget = int(vmem_limit_bytes * 0.85)     # headroom for Mosaic scratch

    if tm is None:
        tm = 512
    if tk_h is None:
        tk_h = 256 if is_v7 else (1024 if gen in (5, 6) else 512)

    # --- row tile selection --------------------------------------------------
    if M <= 128:
        # Tiny inputs: a single full-extent row tile (multiple of 8 sublanes).
        tm = _round_up(max(M, 8), 8)
    else:
        # MXU / lane native: multiple of 128.
        tm = max(128, min(_round_up(tm, 128), _round_up(M, 128)))
        # Avoid excessive row padding (> ~50% of M) on moderate M.
        while tm > 128 and (_round_up(M, tm) - M) * 2 > M:
            tm -= 128
        if is_v7:
            # Keep >= 2 row tiles so the "parallel" axis shards across both TCs.
            while tm > 128 and pl.cdiv(M, tm) < 2:
                tm -= 128
    M_pad = _round_up(M, tm)

    # --- hidden chunk selection: resident fast path vs streaming ------------
    # NOTE: D should ideally be a multiple of 128 (lane-dense output stores).
    H_pad_full = _round_up(H, 128)
    weight_bytes = 2 * D * H_pad_full * cbytes
    resident_use = (2 * weight_bytes                   # W1/W2 (double-buffer alloc)
                    + 2 * tm * D * (cbytes + obytes)   # x / out double buffers
                    + tm * H_pad_full * 4              # f32 GELU intermediate
                    + 2 * (H_pad_full + D) * bbytes)   # biases
    resident = (tk_h >= H) or (resident_use <= vmem_budget)

    if resident:
        H_pad = H_pad_full
        tk_h = H_pad
    else:
        tk_h = max(128, (min(tk_h, H_pad_full) // 128) * 128)
        wbuf = 3 if gen == 5 else 2          # optional deeper buffering on v5e

        def _stream_vmem(tm_, tk_):
            return (2 * tm_ * D * (cbytes + obytes)    # x / out double buffers
                    + wbuf * 2 * D * tk_ * cbytes      # W1 + W2 chunks
                    + tm_ * D * 4                      # f32 accumulator scratch
                    + tm_ * tk_ * 4                    # f32 GELU intermediate
                    + 2 * (H_pad_full + D) * bbytes)   # biases (b1 resident)

        while tk_h > 128 and _stream_vmem(tm, tk_h) > vmem_budget:
            tk_h = max(128, ((tk_h // 2) // 128) * 128)
        while tm > 128 and _stream_vmem(tm, tk_h) > vmem_budget:
            tm = max(128, ((tm // 2) // 128) * 128)
        M_pad = _round_up(M, tm)
        H_pad = _round_up(H, tk_h)

    # --- operand preparation (cast/pad only when needed) ---------------------
    x2 = x.reshape(M, D)
    if x2.dtype != compute_dtype:
        x2 = x2.astype(compute_dtype)
    w1c = w1 if w1.dtype == compute_dtype else w1.astype(compute_dtype)
    w2c = w2 if w2.dtype == compute_dtype else w2.astype(compute_dtype)
    b1c = b1.reshape(1, -1)
    b2c = b2.reshape(1, D)

    if M_pad != M:
        x2 = jnp.pad(x2, ((0, M_pad - M), (0, 0)))
    if H_pad != H:
        # Zero-padding the hidden dim is exact: gelu(0) == 0 and zero W2 rows
        # contribute nothing.
        w1c = jnp.pad(w1c, ((0, 0), (0, H_pad - H)))
        b1c = jnp.pad(b1c, ((0, 0), (0, H_pad - H)))
        w2c = jnp.pad(w2c, ((0, H_pad - H), (0, 0)))

    n_row_tiles = M_pad // tm
    weight_stream_factor = 1 if resident else n_row_tiles
    cost = pl.CostEstimate(
        flops=int(4 * M_pad * D * H_pad),          # two (M, D, H) matmuls
        transcendentals=int(M_pad * H_pad),        # GELU per hidden activation
        bytes_accessed=int(M_pad * D * (cbytes + obytes)
                           + weight_stream_factor * 2 * D * H_pad * cbytes
                           + (H_pad + D) * bbytes),
    )

    if resident:
        grid = (n_row_tiles,)
        in_specs = [
            pl.BlockSpec((tm, D), lambda i: (i, 0)),        # x rows
            pl.BlockSpec((D, H_pad), lambda i: (0, 0)),     # W1 (resident)
            pl.BlockSpec((1, H_pad), lambda i: (0, 0)),     # b1 (resident)
            pl.BlockSpec((H_pad, D), lambda i: (0, 0)),     # W2 (resident)
            pl.BlockSpec((1, D), lambda i: (0, 0)),         # b2 (resident)
        ]
        out_specs = pl.BlockSpec((tm, D), lambda i: (i, 0))
        scratch_shapes = []
        kernel = _make_resident_kernel(approximate_gelu)
        dim_sem = ("parallel",)
    else:
        def _weight_spec(shape, index_map):
            if gen == 5:
                try:
                    return pl.BlockSpec(shape, index_map,
                                        pipeline_mode=pl.Buffered(3))
                except TypeError:
                    pass
            return pl.BlockSpec(shape, index_map)

        grid = (n_row_tiles, H_pad // tk_h)
        in_specs = [
            pl.BlockSpec((tm, D), lambda i, hk: (i, 0)),           # x (const over hk)
            _weight_spec((D, tk_h), lambda i, hk: (0, hk)),        # W1 chunk
            pl.BlockSpec((1, H_pad), lambda i, hk: (0, 0)),        # b1 (resident)
            _weight_spec((tk_h, D), lambda i, hk: (hk, 0)),        # W2 chunk
            pl.BlockSpec((1, D), lambda i, hk: (0, 0)),            # b2 (resident)
        ]
        out_specs = pl.BlockSpec((tm, D), lambda i, hk: (i, 0))
        scratch_shapes = [pltpu.VMEM((tm, D), jnp.float32)]        # f32 accumulator
        kernel = _make_streaming_kernel(tk_h, approximate_gelu)
        dim_sem = ("parallel", "arbitrary")

    out2 = pl.pallas_call(
        kernel,
        out_shape=jax.ShapeDtypeStruct((M_pad, D), out_dtype),
        grid_spec=pltpu.PrefetchScalarGridSpec(
            num_scalar_prefetch=0,
            grid=grid,
            in_specs=in_specs,
            out_specs=out_specs,
            scratch_shapes=scratch_shapes,
        ),
        compiler_params=pltpu.CompilerParams(
            dimension_semantics=dim_sem,
            vmem_limit_bytes=vmem_limit_bytes,
        ),
        cost_estimate=cost,
    )(x2, w1c, b1c, w2c, b2c)

    return out2[:M].reshape(B, S, D)


def init_params(key, dim, hidden_dim, dtype=jnp.float32):
    # Deterministic synthetic init mimicking nn.Linear (uniform(+-1/sqrt(fan_in))).
    k1, k2, k3, k4 = jax.random.split(key, 4)
    lim1 = 1.0 / math.sqrt(dim)
    lim2 = 1.0 / math.sqrt(hidden_dim)
    w1 = jax.random.uniform(k1, (dim, hidden_dim), dtype, -lim1, lim1)
    b1 = jax.random.uniform(k2, (hidden_dim,), dtype, -lim1, lim1)
    w2 = jax.random.uniform(k3, (hidden_dim, dim), dtype, -lim2, lim2)
    b2 = jax.random.uniform(k4, (dim,), dtype, -lim2, lim2)
    return w1, b1, w2, b2


if __name__ == "__main__":
    batch, seq, dim, hidden_dim = 2, 8, 32, 64
    key = jax.random.PRNGKey(0)
    kx, kp = jax.random.split(key)
    x = jax.random.normal(kx, (batch, seq, dim), jnp.float32)
    w1, b1, w2, b2 = init_params(kp, dim, hidden_dim)

    # Pre-cast weights once (amortized across calls), then run the kernel.
    w1c, b1c, w2c, b2c = prepare_params(w1, b1, w2, b2, compute_dtype=jnp.bfloat16)
    out = feed_forward(x, w1c, b1c, w2c, b2c)
    jax.block_until_ready(out)
    assert out.shape == (batch, seq, dim)

    # Reference mirroring the kernel's bf16-matmul / f32-accumulate recipe.
    xb = x.reshape(-1, dim).astype(jnp.bfloat16)
    h = jnp.dot(xb, w1.astype(jnp.bfloat16), preferred_element_type=jnp.float32) + b1
    h = 0.5 * h * (1.0 + lax.erf(h / math.sqrt(2.0)))
    ref = (jnp.dot(h.astype(jnp.bfloat16), w2.astype(jnp.bfloat16),
                   preferred_element_type=jnp.float32) + b2).reshape(batch, seq, dim)
    assert jnp.allclose(out, ref.astype(out.dtype), atol=1e-3, rtol=1e-3), (
        float(jnp.max(jnp.abs(out - ref))))

    # Loose check against the pure-f32 reference (module semantics, eval mode).
    hf = x.reshape(-1, dim) @ w1 + b1
    hf = 0.5 * hf * (1.0 + lax.erf(hf / math.sqrt(2.0)))
    ref_f32 = (hf @ w2 + b2).reshape(batch, seq, dim)
    assert jnp.allclose(out, ref_f32, atol=5e-2, rtol=5e-2)

    print("KERNEL_OK")
</pallas_src>

<mosaic_0001>
module attributes {stable_mosaic.version = 11 : i64} {
  func.func @kernel(%arg0: i32, %arg1: memref<16x32xbf16, #tpu.memory_space<vmem>>, %arg2: memref<32x128xbf16, #tpu.memory_space<vmem>>, %arg3: memref<1x128xf32, #tpu.memory_space<vmem>>, %arg4: memref<128x32xbf16, #tpu.memory_space<vmem>>, %arg5: memref<1x32xf32, #tpu.memory_space<vmem>>, %arg6: memref<16x32xf32, #tpu.memory_space<vmem>>) attributes {dimension_semantics = [#tpu.dimension_semantics<parallel>], iteration_bounds = array<i64: 1>, scalar_prefetch = 0 : i64, scratch_operands = 0 : i64, tpu.core_type = #tpu.core_type<tc>, window_params = [{transform_indices = @transform_0, window_bounds = array<i64: 16, 32>}, {pipeline_mode = #tpu.pipeline_mode<synchronous>, transform_indices = @transform_1, window_bounds = array<i64: 32, 128>}, {pipeline_mode = #tpu.pipeline_mode<synchronous>, transform_indices = @transform_2, window_bounds = array<i64: 1, 128>}, {pipeline_mode = #tpu.pipeline_mode<synchronous>, transform_indices = @transform_3, window_bounds = array<i64: 128, 32>}, {pipeline_mode = #tpu.pipeline_mode<synchronous>, transform_indices = @transform_4, window_bounds = array<i64: 1, 32>}, {transform_indices = @transform_5, window_bounds = array<i64: 16, 32>}]} {
    %c0 = arith.constant 0 : index
    %c0_0 = arith.constant 0 : index
    %0 = vector.load %arg1[%c0, %c0_0] : memref<16x32xbf16, #tpu.memory_space<vmem>>, vector<16x32xbf16>
    %c0_1 = arith.constant 0 : index
    %c0_2 = arith.constant 0 : index
    %1 = vector.load %arg2[%c0_1, %c0_2] : memref<32x128xbf16, #tpu.memory_space<vmem>>, vector<32x128xbf16>
    %cst = arith.constant dense<0.000000e+00> : vector<16x128xf32>
    %2 = tpu.matmul %0, %1, %cst {dimension_numbers = #tpu.dot_dimension_numbers<[1], [0], [0], [1], [0, 0, 1, 1], [], []>} : vector<16x32xbf16>, vector<32x128xbf16>, vector<16x128xf32> -> vector<16x128xf32>
    %c0_3 = arith.constant 0 : index
    %c0_4 = arith.constant 0 : index
    %3 = vector.load %arg3[%c0_3, %c0_4] : memref<1x128xf32, #tpu.memory_space<vmem>>, vector<1x128xf32>
    %4 = vector.broadcast %3 : vector<1x128xf32> to vector<16x128xf32>
    %5 = arith.addf %2, %4 : vector<16x128xf32>
    %cst_5 = arith.constant 5.000000e-01 : f32
    %6 = vector.broadcast %cst_5 : f32 to vector<16x128xf32>
    %7 = arith.mulf %6, %5 : vector<16x128xf32>
    %cst_6 = arith.constant 0.707106769 : f32
    %8 = vector.broadcast %cst_6 : f32 to vector<16x128xf32>
    %9 = arith.mulf %5, %8 : vector<16x128xf32>
    %10 = math.erf %9 : vector<16x128xf32>
    %cst_7 = arith.constant 1.000000e+00 : f32
    %11 = vector.broadcast %cst_7 : f32 to vector<16x128xf32>
    %12 = arith.addf %11, %10 : vector<16x128xf32>
    %13 = arith.mulf %7, %12 : vector<16x128xf32>
    %14 = arith.truncf %13 : vector<16x128xf32> to vector<16x128xbf16>
    %c0_8 = arith.constant 0 : index
    %c0_9 = arith.constant 0 : index
    %15 = vector.load %arg4[%c0_8, %c0_9] : memref<128x32xbf16, #tpu.memory_space<vmem>>, vector<128x32xbf16>
    %cst_10 = arith.constant dense<0.000000e+00> : vector<16x32xf32>
    %16 = tpu.matmul %14, %15, %cst_10 {dimension_numbers = #tpu.dot_dimension_numbers<[1], [0], [0], [1], [0, 0, 1, 1], [], []>} : vector<16x128xbf16>, vector<128x32xbf16>, vector<16x32xf32> -> vector<16x32xf32>
    %c0_11 = arith.constant 0 : index
    %c0_12 = arith.constant 0 : index
    %17 = vector.load %arg5[%c0_11, %c0_12] : memref<1x32xf32, #tpu.memory_space<vmem>>, vector<1x32xf32>
    %18 = vector.broadcast %17 : vector<1x32xf32> to vector<16x32xf32>
    %19 = arith.addf %16, %18 : vector<16x32xf32>
    %c0_13 = arith.constant 0 : index
    %c0_14 = arith.constant 0 : index
    %20 = vector.load %arg6[%c0_13, %c0_14] : memref<16x32xf32, #tpu.memory_space<vmem>>, vector<16x32xf32>
    tpu.vector_store %arg6[%c0_13, %c0_14], %19 {strides = array<i32>} : memref<16x32xf32, #tpu.memory_space<vmem>>, vector<16x32xf32>,
    return
  }
  func.func @transform_0(%arg0: i32) -> (i32, i32) {
    %c0_i32 = arith.constant 0 : i32
    %c0_i32_0 = arith.constant 0 : i32
    return %arg0, %c0_i32 : i32, i32
  }
  func.func @transform_1(%arg0: i32) -> (i32, i32) {
    %c0_i32 = arith.constant 0 : i32
    %c0_i32_0 = arith.constant 0 : i32
    %c0_i32_1 = arith.constant 0 : i32
    return %c0_i32, %c0_i32_0 : i32, i32
  }
  func.func @transform_2(%arg0: i32) -> (i32, i32) {
    %c0_i32 = arith.constant 0 : i32
    %c0_i32_0 = arith.constant 0 : i32
    %c0_i32_1 = arith.constant 0 : i32
    return %c0_i32, %c0_i32_0 : i32, i32
  }
  func.func @transform_3(%arg0: i32) -> (i32, i32) {
    %c0_i32 = arith.constant 0 : i32
    %c0_i32_0 = arith.constant 0 : i32
    %c0_i32_1 = arith.constant 0 : i32
    return %c0_i32, %c0_i32_0 : i32, i32
  }
  func.func @transform_4(%arg0: i32) -> (i32, i32) {
    %c0_i32 = arith.constant 0 : i32
    %c0_i32_0 = arith.constant 0 : i32
    %c0_i32_1 = arith.constant 0 : i32
    return %c0_i32, %c0_i32_0 : i32, i32
  }
  func.func @transform_5(%arg0: i32) -> (i32, i32) {
    %c0_i32 = arith.constant 0 : i32
    %c0_i32_0 = arith.constant 0 : i32
    return %arg0, %c0_i32 : i32, i32
  }
}

</mosaic_0001>

<bundles_post_ra>
// kernel: tpu_custom_call.1
= control target key start
LH: loop header
LB: loop body
LE: loop exit
PB: predicated region body
PF: predicated region fallthrough
CT: control target
= control target key end

     0   :  { %10 = vsyncpa [#allocation3], 0  ;;  %s659_s0 = inlined_call_operand.hbm [shape: bf16[16,32], index: 0, kind: input, shape index: {}]   ;;  %s660_s1 = inlined_call_operand.hbm [shape: bf16[32,128], index: 1, kind: input, shape index: {}]   ;;  %s661_s2 = inlined_call_operand.hbm [shape: f32[1,128], index: 2, kind: input, shape index: {}]   ;;  %s662_s3 = inlined_call_operand.hbm [shape: bf16[128,32], index: 3, kind: input, shape index: {}]   ;;  %s663_s4 = inlined_call_operand.hbm [shape: f32[1,32], index: 4, kind: input, shape index: {}]   ;;  %s664_s5 = inlined_call_operand.hbm [shape: f32[16,32], index: 5, kind: output, shape index: {}]  }
   0x1   :  { %11 = vsyncpa [#allocation6], 0 }
   0x2   :  { %12 = vsyncpa [#allocation9], 0 }
   0x3   :  { %13 = vsyncpa [#allocation4], 0  ;;  %s526_s18 = smov [#allocation5]   ;;  %s527_s20 = smov [#allocation8]  }
   0x4   :  { %s31_s19 = sshll.u32 %s526_s18, 4  ;;  %s53_s21 = sshll.u32 %s527_s20, 4  ;;  %s32_s19 = int_to_ptr.vmem [resolvable:$true] %s31_s19  ;;  %s568_s21 = int_to_ptr.vmem [resolvable:$true] %s53_s21 }
   0x5   :  { %s386_s24 = scalar_lea.hbm %s660_s1, 256 }
   0x6   :  { %p387_p0 = scmp.ne.s32.totalorder %s660_s1, %s386_s24  ;;  %p390_p1 = scmp.lt.u32.totalorder %s386_s24, %s660_s1 }
   0x8   :  { %p392_p2 = pnand %p390_p1, %p387_p0 }
   0xa   :  { %395 = shalt.err (!%p392_p2)
}
   0xb   :  { %s396_s29 = scalar_lea.vmem %s32_s19, 256  ;;  %p401_p4 = scmp.lt.s32.totalorder %s32_s19, %s32_s19 }
   0xc   :  { %p397_p3 = scmp.ne.s32.totalorder %s32_s19, %s396_s29  ;;  %p402_p5 = scmp.lt.s32.totalorder %s396_s29, %s396_s29 }
   0xe   :  { %p403_p6 = por %p402_p5, %p401_p4 }
  0x10   :  { %p404_p7 = pnand %p403_p6, %p397_p3 }
  0x12   :  { %407 = shalt.err (!%p404_p7)
}
  0x13   :  { %s528_s30 = smov 64   ;;  %s529_s6 = smov 4  }
  0x14   :  { %37 = dma.hbm_to_vmem [thread:$0]  %s660_s1, 256, %s32_s19, [#allocation6], %s528_s30, %s528_s30, %s529_s6  }
  0x15   :  { %s408_s11 = scalar_lea.hbm %s662_s3, 1024 }
  0x16   :  { %p409_p8 = scmp.ne.s32.totalorder %s662_s3, %s408_s11  ;;  %p412_p9 = scmp.lt.u32.totalorder %s408_s11, %s662_s3 }
  0x18   :  { %p414_p10 = pnand %p412_p9, %p409_p8 }
  0x1a   :  { %417 = shalt.err (!%p414_p10)
}
  0x1b   :  { %s418_s16 = scalar_lea.vmem %s568_s21, 1024  ;;  %p423_p12 = scmp.lt.s32.totalorder %s568_s21, %s568_s21 }
  0x1c   :  { %p419_p11 = scmp.ne.s32.totalorder %s568_s21, %s418_s16  ;;  %p424_p13 = scmp.lt.s32.totalorder %s418_s16, %s418_s16 }
  0x1e   :  { %p425_p0 = por %p424_p13, %p423_p12 }
  0x20   :  { %p426_p1 = pnand %p425_p0, %p419_p11 }
  0x22   :  { %429 = shalt.err (!%p426_p1)
}
  0x23   :  { %59 = dma.hbm_to_vmem [thread:$0]  %s662_s3, 1024, %s568_s21, [#allocation9], %s528_s30, %s528_s30, %s529_s6  }
  0x24   :  { %s530_s18 = smov [#allocation2]   ;;  %s531_s20 = smov [#allocation7]  }
  0x25   :  { %s19_s19 = sshll.u32 %s530_s18, 4  ;;  %s44_s22 = sshll.u32 %s531_s20, 4  ;;  %s20_s19 = int_to_ptr.vmem [resolvable:$true] %s19_s19  ;;  %s45_s22 = int_to_ptr.vmem [resolvable:$true] %s44_s22 }
  0x26   :  { %s430_s25 = scalar_lea.hbm %s659_s0, 128 }
  0x27   :  { %p431_p2 = scmp.ne.s32.totalorder %s659_s0, %s430_s25  ;;  %p434_p3 = scmp.lt.u32.totalorder %s430_s25, %s659_s0 }
  0x29   :  { %p436_p4 = pnand %p434_p3, %p431_p2 }
  0x2b   :  { %439 = shalt.err (!%p436_p4)
}
  0x2c   :  { %s440_s3 = scalar_lea.vmem %s20_s19, 128  ;;  %p445_p6 = scmp.lt.s32.totalorder %s20_s19, %s20_s19 }
  0x2d   :  { %p441_p5 = scmp.ne.s32.totalorder %s20_s19, %s440_s3  ;;  %p446_p7 = scmp.lt.s32.totalorder %s440_s3, %s440_s3 }
  0x2f   :  { %p447_p8 = por %p446_p7, %p445_p6 }
  0x31   :  { %p448_p9 = pnand %p447_p8, %p441_p5 }
  0x33   :  { %451 = shalt.err (!%p448_p9)
}
  0x34   :  { %25 = dma.hbm_to_vmem [thread:$0]  %s659_s0, 128, %s20_s19, [#allocation3], %s528_s30, %s528_s30, %s529_s6  }
  0x35   :  { %s452_s10 = scalar_lea.hbm %s661_s2, 16 }
  0x36   :  { %p453_p10 = scmp.ne.s32.totalorder %s661_s2, %s452_s10  ;;  %p456_p11 = scmp.lt.u32.totalorder %s452_s10, %s661_s2 }
  0x38   :  { %p458_p12 = pnand %p456_p11, %p453_p10 }
  0x3a   :  { %461 = shalt.err (!%p458_p12)
}
  0x3b   :  { %s462_s15 = scalar_lea.vmem %s45_s22, 16  ;;  %s466_s16 = scalar_lea.vmem %s45_s22, 32 }
  0x3c   :  { %p463_p13 = scmp.ne.s32.totalorder %s45_s22, %s462_s15  ;;  %p467_p0 = scmp.lt.s32.totalorder %s45_s22, %s45_s22 }
  0x3d   :  { %p468_p1 = scmp.lt.s32.totalorder %s466_s16, %s462_s15 }
  0x3f   :  { %p469_p2 = por %p468_p1, %p467_p0 }
  0x41   :  { %p470_p3 = pnand %p469_p2, %p463_p13 }
  0x43   :  { %473 = shalt.err (!%p470_p3)
}
  0x44   :  { %47 = dma.hbm_to_vmem [thread:$0]  %s661_s2, 16, %s45_s22, [#allocation6]  }
  0x45   :  { %s532_s6 = smov [#allocation10]   ;;  %s474_s19 = scalar_lea.hbm %s663_s4, 16 }
  0x46   :  { %s66_s1 = sshll.u32 %s532_s6, 4  ;;  %p475_p4 = scmp.ne.s32.totalorder %s663_s4, %s474_s19  ;;  %s67_s1 = int_to_ptr.vmem [resolvable:$true] %s66_s1 }
  0x47   :  { %p478_p5 = scmp.lt.u32.totalorder %s474_s19, %s663_s4 }
  0x49   :  { %p480_p6 = pnand %p478_p5, %p475_p4 }
  0x4b   :  { %483 = shalt.err (!%p480_p6)
}
  0x4c   :  { %s484_s26 = scalar_lea.vmem %s67_s1, 16  ;;  %s488_s2 = scalar_lea.vmem %s67_s1, 32 }
  0x4d   :  { %p485_p7 = scmp.ne.s32.totalorder %s67_s1, %s484_s26  ;;  %p489_p8 = scmp.lt.s32.totalorder %s67_s1, %s67_s1 }
  0x4e   :  { %p490_p9 = scmp.lt.s32.totalorder %s488_s2, %s484_s26 }
  0x50   :  { %p491_p10 = por %p490_p9, %p489_p8 }
  0x52   :  { %p492_p11 = pnand %p491_p10, %p485_p7 }
  0x54   :  { %495 = shalt.err (!%p492_p11)
}
  0x55   :  { %69 = dma.hbm_to_vmem [thread:$0]  %s663_s4, 16, %s67_s1, [#allocation9]  }
  0x56   :  { %518 = dma.done.wait [#allocation3], 128  }
  0x57   :  { %519 = vsyncadd [#allocation3], 4294967168 }
  0x58   :  { %520 = dma.done.wait [#allocation6], 272  }
  0x59   :  { %521 = vsyncadd [#allocation6], 4294967024 }
  0x5a   :  { %522 = dma.done.wait [#allocation9], 1040  }
  0x5b   :  { %523 = vsyncadd [#allocation9], 4294966256  ;;  %v533_v0 = vmov 0.0   ;;  %vm534_vm0 = vmmov 0   ;;  %v371_v1 = vld [vmem:[#allocation5] sm:$0xff]   ;;  %v372_v2 = vld [vmem:[#allocation5 + $0x8] sm:$0xff]  }
  0x5c   :  { %331 = vmatprep.subr.bf16.mxu0 %v533_v0  ;;  %335 = vmatprep.mubr.msk.bf16.mxu0 %vm534_vm0, %v533_v0  ;;  %v374_v3 = vld [vmem:[#allocation8] sm:$0xff]   ;;  %vm116_vm1 = vcmask 261120   ;;  %v375_v5 = vld [vmem:[#allocation8 + $0x8] sm:$0xff]   ;;  %v376_v6 = vld [vmem:[#allocation8 + $0x10] sm:$0xff]   ;;  %s535_s4 = smov [#allocation11]  }
  0x5d   :  { %339 = vmatprep.subr.bf16.mxu1 %v533_v0  ;;  %355 = vmatprep.mubr.msk.bf16.mxu1 %vm534_vm0, %v533_v0  ;;  %v373_v4 = vld [vmem:[#allocation2] sm:$0xff]   ;;  %v377_v7 = vld [vmem:[#allocation8 + $0x18] sm:$0xff]   ;;  %v380_v10 = vld [vmem:[#allocation8 + $0x30] sm:$0xff]   ;;  %s291_s28 = sshll.u32 %s535_s4, 4  ;;  %s292_s28 = int_to_ptr.vmem [resolvable:$true] %s291_s28 }
  0x5e   :  { %332 = vmatpush3.bf16.msra.mxu0 %v371_v1  ;;  %340 = vmatpush3.bf16.msra.mxu1 %v374_v3  ;;  %v378_v8 = vld [vmem:[#allocation8 + $0x20] sm:$0xff]   ;;  %v379_v9 = vld [vmem:[#allocation8 + $0x28] sm:$0xff]   ;;  %v381_v11 = vld [vmem:[#allocation8 + $0x38] sm:$0xff]   ;;  %s496_s29 = scalar_lea.vmem %s292_s28, 256  ;;  %p501_p13 = scmp.lt.s32.totalorder %s292_s28, %s292_s28 }
  0x5f   :  { %333 = vmatprep.subr.bf16.mxu0 %v533_v0  ;;  %341 = vmatprep.subr.bf16.mxu1 %v533_v0  ;;  %v305_v12 = vld [vmem:[#allocation7] ss:$0 sm:$0xff]  ;;  %v310_v30 = vld [vmem:[#allocation10] ss:$0 sm:$0xff]  ;;  %p497_p12 = scmp.ne.s32.totalorder %s292_s28, %s496_s29  ;;  %p502_p0 = scmp.lt.s32.totalorder %s496_s29, %s496_s29 }
  0x61   :  { %p503_p1 = por %p502_p0, %p501_p13 }
  0x62   :  { %334 = vmatpush3.bf16.msra.mxu0 %v372_v2  ;;  %342 = vmatpush3.bf16.msra.mxu1 %v375_v5 }
  0x63   :  { %343 = vmatprep.subr.bf16.mxu1 %v533_v0  ;;  %p504_p2 = pnand %p503_p1, %p497_p12 }
  0x65   :  { %336 = vmatmul.mubr.msk.bf16.vlgmr.msra.gmra.mrb[0].mxu0 %vm116_vm1, %v373_v4 }
  0x66   :  { %344 = vmatpush3.bf16.msra.mxu1 %v376_v6 }
  0x67   :  { %345 = vmatprep.subr.bf16.mxu1 %v533_v0 }
  0x6a   :  { %346 = vmatpush3.bf16.msra.mxu1 %v377_v7 }
  0x6b   :  { %347 = vmatprep.subr.bf16.mxu1 %v533_v0 }
  0x6e   :  { %348 = vmatpush3.bf16.msra.mxu1 %v378_v8 }
  0x6f   :  { %349 = vmatprep.subr.bf16.mxu1 %v533_v0 }
  0x72   :  { %350 = vmatpush3.bf16.msra.mxu1 %v379_v9 }
  0x73   :  { %351 = vmatprep.subr.bf16.mxu1 %v533_v0 }
  0x76   :  { %352 = vmatpush3.bf16.msra.mxu1 %v380_v10 }
  0x77   :  { %353 = vmatprep.subr.bf16.mxu1 %v533_v0 }
  0x7a   :  { %354 = vmatpush3.bf16.msra.mxu1 %v381_v11 }
 0x138   :  { %v154_v13 = vpop.f32.mrb[0].mxu0 }
 0x139   :  { %v155_v14 = vadd.f32 %v305_v12, %v154_v13  ;;  %v337_v15 = vpop.f32.mrb[1].mxu0 }
 0x13a   :  { %v157_v16 = vpop.f32.mrb[2].mxu0 }
 0x13b   :  { %v163_v17 = vmul.f32 0.70710677, %v155_v14  ;;  %v158_v18 = vadd.f32 %v305_v12, %v157_v16  ;;  %v338_v19 = vpop.f32.mrb[3].mxu0  ;;  %v161_v24 = vmul.f32 0.5, %v155_v14 }
 0x13d   :  { %382 = verf.f32 %v163_v17  ;;  %v164_v20 = vmul.f32 0.70710677, %v158_v18  ;;  %v162_v25 = vmul.f32 0.5, %v158_v18 }
 0x13f   :  { %384 = verf.f32 %v164_v20 }
 0x147   :  { %v383_v21 = vpop.eup %382 }
 0x148   :  { %v167_v22 = vadd.f32 1.0, %v383_v21 }
 0x149   :  { %v385_v23 = vpop.eup %384 }
 0x14a   :  { %v168_v26 = vadd.f32 1.0, %v385_v23  ;;  %v169_v27 = vmul.f32 %v167_v22, %v161_v24 }
 0x14c   :  { %v170_v28 = vmul.f32 %v168_v26, %v162_v25 }
 0x14e   :  { %v171_v29 = vpack.c.bf16 %v170_v28, %v169_v27 }
 0x150   :  { %356 = vmatmul.mubr.bf16.vlgmr.msra.gmra.mrb[0].mxu1 %v171_v29 }
 0x223   :  { %v277_v31 = vpop.f32.mrb[0].mxu1 }
 0x224   :  { %v278_v32 = vadd.f32 %v310_v30, %v277_v31  ;;  %v357_v33 = vpop.f32.mrb[1].mxu1 }
 0x225   :  { %v280_v34 = vpop.f32.mrb[2].mxu1 }
 0x226   :  { %284 = vst.msk [vmem:[#allocation11] sm:$0xff] %vm116_vm1, %v278_v32  ;;  %v281_v35 = vadd.f32 %v310_v30, %v280_v34  ;;  %v358_v36 = vpop.f32.mrb[3].mxu1 }
 0x228   :  { %285 = vst.msk [vmem:[#allocation11 + $0x8] sm:$0xff] %vm116_vm1, %v281_v35 }
 0x229   :  { %507 = shalt.err (!%p504_p2)
}
 0x22a   :  { %s508_s7 = scalar_lea.hbm %s664_s5, 256 }
 0x22b   :  { %p509_p3 = scmp.ne.s32.totalorder %s664_s5, %s508_s7  ;;  %p512_p4 = scmp.lt.u32.totalorder %s508_s7, %s664_s5 }
 0x22d   :  { %p514_p5 = pnand %p512_p4, %p509_p3 }
 0x22f   :  { %517 = shalt.err (!%p514_p5)
}
 0x230   :  { %s536_s12 = smov 128   ;;  %s537_s13 = smov 8  }
 0x231   :  { %297 = dma.vmem_to_hbm [thread:$0]  %s292_s28, 256, %s664_s5, [#allocation4], %s536_s12, %s536_s12, %s537_s13  }
 0x232   :  { %524 = dma.done.wait [#allocation4], 256  }
 0x233   :  { %525 = vsyncadd [#allocation4], 4294967040 }
 0x234   :  { %301 = vsyncpa [#allocation3], 1 }
 0x235   :  { %302 = vsyncpa [#allocation6], 1 }
 0x236   :  { %303 = vsyncpa [#allocation9], 1 }
 0x237   :  { %304 = vsyncpa [#allocation4], 1 }

</bundles_post_ra>
